<compile_context>
chip_gen: v7x
topology: tpu7x:2x2x1
jax: 0.10.0
libtpu: 0.0.40
codegen_flags: <defaults>
</compile_context>

<pallas_src>
import functools

import jax
import jax.numpy as jnp
from jax import lax
from jax.experimental import pallas as pl
from jax.experimental.pallas import tpu as pltpu

_HIGHEST = jax.lax.Precision.HIGHEST
_BN_EPS = 1e-5


def _resblock_kernel(x_ref, mask_ref, w1_ref, w2_ref, o_ref,
                     cols1_ref, cols2_ref, *, shifts):
    # x_ref:    (1, C_in, HW)        one image: channels on sublanes, H*W on lanes
    # mask_ref: (9, HW)              0/1 edge-validity mask per 3x3 tap
    # w1_ref:   (C_mid, 9*C_in + 1)  conv1 im2col weights, BN1 scale folded in,
    #                                last column = BN1 bias (paired with ones-row)
    # w2_ref:   (C_out, 9*C_mid + 1) conv2 weights + BN2, same layout
    # o_ref:    (1, C_out, HW)
    # cols1/2:  VMEM scratch im2col buffers (9*C + 1, HW)
    hw = x_ref.shape[-1]
    c_in = x_ref.shape[1]
    c_mid = w1_ref.shape[0]

    # Hoist the 9 (1, HW) edge-mask rows; reused by both convs.
    mks = [mask_ref[pl.ds(k, 1), :] for k in range(9)]
    ones_row = jnp.ones((1, hw), jnp.float32)

    def im2col(src, cols_ref, c):
        # Rows [k*c, (k+1)*c) <- tap k of `src` (lane-roll + edge mask);
        # trailing ones-row carries the folded BN bias through the matmul.
        for k, s in enumerate(shifts):
            rolled = pltpu.roll(src, shift=s, axis=1) if s else src
            cols_ref[pl.ds(k * c, c), :] = rolled * mks[k]
        cols_ref[pl.ds(9 * c, 1), :] = ones_row

    x = x_ref[0].astype(jnp.float32)                       # (C_in, HW)

    # ---- conv1 (3x3, pad 1, no bias) + BN1 folded, as one MXU matmul; ReLU6 ----
    im2col(x, cols1_ref, c_in)
    h = jnp.dot(w1_ref[...], cols1_ref[...],
                preferred_element_type=jnp.float32, precision=_HIGHEST)
    h = jnp.clip(h, 0.0, 6.0)                              # ReLU6

    # ---- conv2 (3x3, pad 1, no bias) + BN2 folded; no activation ----
    im2col(h, cols2_ref, c_mid)
    y = jnp.dot(w2_ref[...], cols2_ref[...],
                preferred_element_type=jnp.float32, precision=_HIGHEST)

    o_ref[0] = y.astype(o_ref.dtype)


def _edge_masks(H, W):
    """(9, HW) 0/1 masks: mask[k, p]=1 iff input position p + dy*W + dx of tap
    k=(dy+1)*3+(dx+1) lies inside the image (i.e. not in the zero padding)."""
    idx = jnp.arange(H * W, dtype=jnp.int32)
    hh, ww = idx // W, idx % W
    rows = []
    for dy in (-1, 0, 1):
        for dx in (-1, 0, 1):
            rows.append((hh + dy >= 0) & (hh + dy < H)
                        & (ww + dx >= 0) & (ww + dx < W))
    return jnp.stack(rows).astype(jnp.float32)


def _fold_bn_into_conv(w, gamma, beta, mean, var):
    """(O, I, 3, 3) conv weight + eval-mode BN -> (O, 9*I + 1) im2col weight.

    Column ordering matches the kernel's scratch rows: col = k*I + c with
    k = ky*3 + kx.  BN scale multiplies each output-channel row; the BN bias is
    appended as the last column (multiplied by the kernel's ones-row).
    """
    O, I = w.shape[:2]
    scale = gamma / jnp.sqrt(var + _BN_EPS)                       # (O,)
    bias = beta - mean * scale                                    # (O,)
    w_cols = jnp.transpose(w, (0, 2, 3, 1)).reshape(O, 9 * I)     # (O, 9*I)
    w_cols = w_cols * scale[:, None]
    return jnp.concatenate([w_cols, bias[:, None]], axis=1).astype(jnp.float32)


@jax.jit
def res_block(x, w1, g1, be1, m1, v1, w2, g2, be2, m2, v2):
    """ResBlock forward: conv3x3 -> BN -> ReLU6 -> conv3x3 -> BN (eval-mode BN).

    x : (N, C_in, H, W)     w1: (C_mid, C_in, 3, 3)    w2: (C_out, C_mid, 3, 3)
    g*/be*/m*/v*: per-channel BN gamma / beta / running_mean / running_var.
    """
    N, C_in, H, W = x.shape
    C_mid = w1.shape[0]
    C_out = w2.shape[0]
    HW = H * W

    x_flat = x.reshape(N, C_in, HW)          # free view — stays NCHW-native
    masks = _edge_masks(H, W)                # (9, HW)
    w1_aug = _fold_bn_into_conv(w1, g1, be1, m1, v1)   # (C_mid, 9*C_in + 1)
    w2_aug = _fold_bn_into_conv(w2, g2, be2, m2, v2)   # (C_out, 9*C_mid + 1)

    # Static lane shifts: output position p reads input p + dy*W + dx, i.e.
    # roll by (-(dy*W+dx)) mod HW; wrapped-around lanes are zeroed by the masks.
    shifts = tuple((-(dy * W + dx)) % HW
                   for dy in (-1, 0, 1) for dx in (-1, 0, 1))

    kernel = functools.partial(_resblock_kernel, shifts=shifts)

    out_flat = pl.pallas_call(
        kernel,
        out_shape=jax.ShapeDtypeStruct((N, C_out, HW), x.dtype),
        grid_spec=pltpu.PrefetchScalarGridSpec(
            num_scalar_prefetch=0,
            grid=(N,),                       # even N -> both v7x TensorCores busy
            in_specs=[
                pl.BlockSpec((1, C_in, HW), lambda n: (n, 0, 0)),
                pl.BlockSpec((9, HW), lambda n: (0, 0)),              # DMA'd once
                pl.BlockSpec((C_mid, 9 * C_in + 1), lambda n: (0, 0)),
                pl.BlockSpec((C_out, 9 * C_mid + 1), lambda n: (0, 0)),
            ],
            out_specs=pl.BlockSpec((1, C_out, HW), lambda n: (n, 0, 0)),
            scratch_shapes=[
                pltpu.VMEM((9 * C_in + 1, HW), jnp.float32),   # im2col for conv1
                pltpu.VMEM((9 * C_mid + 1, HW), jnp.float32),  # im2col for conv2
            ],
        ),
        compiler_params=pltpu.CompilerParams(
            dimension_semantics=("parallel",),
        ),
    )(x_flat, masks, w1_aug, w2_aug)

    return out_flat.reshape(N, C_out, H, W)


def _reference(x, w1, g1, be1, m1, v1, w2, g2, be2, m2, v2):
    """Pure-JAX reference: Conv2d(3x3, pad=1, no bias) -> BN(eval) -> ReLU6 -> same -> BN."""
    dn = ("NCHW", "OIHW", "NCHW")
    h = lax.conv_general_dilated(x, w1, (1, 1), ((1, 1), (1, 1)),
                                 dimension_numbers=dn, precision=_HIGHEST)
    h = (h - m1[None, :, None, None]) / jnp.sqrt(v1[None, :, None, None] + _BN_EPS)
    h = h * g1[None, :, None, None] + be1[None, :, None, None]
    h = jnp.clip(h, 0.0, 6.0)
    y = lax.conv_general_dilated(h, w2, (1, 1), ((1, 1), (1, 1)),
                                 dimension_numbers=dn, precision=_HIGHEST)
    y = (y - m2[None, :, None, None]) / jnp.sqrt(v2[None, :, None, None] + _BN_EPS)
    y = y * g2[None, :, None, None] + be2[None, :, None, None]
    return y


if __name__ == "__main__":
    key = jax.random.PRNGKey(0)
    keys = jax.random.split(key, 11)

    # Module defaults: kernel_size=3, stride=1, expand_ratio=1 -> C_mid = C_in,
    # use_bias=(False, False), norm=('bn2d', 'bn2d'), act=('relu6', None).
    N, C_in, H, W = 2, 4, 16, 16
    C_mid, C_out = 4, 8

    x = jax.random.normal(keys[0], (N, C_in, H, W), jnp.float32)
    w1 = jax.random.normal(keys[1], (C_mid, C_in, 3, 3), jnp.float32) * 0.2
    g1 = 1.0 + 0.1 * jax.random.normal(keys[2], (C_mid,), jnp.float32)
    be1 = 0.1 * jax.random.normal(keys[3], (C_mid,), jnp.float32)
    m1 = 0.1 * jax.random.normal(keys[4], (C_mid,), jnp.float32)
    v1 = jax.random.uniform(keys[5], (C_mid,), jnp.float32, 0.5, 1.5)
    w2 = jax.random.normal(keys[6], (C_out, C_mid, 3, 3), jnp.float32) * 0.2
    g2 = 1.0 + 0.1 * jax.random.normal(keys[7], (C_out,), jnp.float32)
    be2 = 0.1 * jax.random.normal(keys[8], (C_out,), jnp.float32)
    m2 = 0.1 * jax.random.normal(keys[9], (C_out,), jnp.float32)
    v2 = jax.random.uniform(keys[10], (C_out,), jnp.float32, 0.5, 1.5)

    out = res_block(x, w1, g1, be1, m1, v1, w2, g2, be2, m2, v2)
    out = jax.block_until_ready(out)

    ref = _reference(x, w1, g1, be1, m1, v1, w2, g2, be2, m2, v2)
    assert out.shape == (N, C_out, H, W)
    assert jnp.allclose(out, ref, atol=1e-3, rtol=1e-3), "mismatch vs reference"

    print("KERNEL_OK")
</pallas_src>

<mosaic_0001>
module attributes {stable_mosaic.version = 11 : i64} {
  func.func @_resblock_kernel(%arg0: i32, %arg1: memref<1x4x256xf32, #tpu.memory_space<vmem>>, %arg2: memref<9x256xf32, #tpu.memory_space<vmem>>, %arg3: memref<4x37xf32, #tpu.memory_space<vmem>>, %arg4: memref<8x37xf32, #tpu.memory_space<vmem>>, %arg5: memref<1x8x256xf32, #tpu.memory_space<vmem>>, %arg6: memref<37x256xf32, #tpu.memory_space<vmem>>, %arg7: memref<37x256xf32, #tpu.memory_space<vmem>>) attributes {dimension_semantics = [#tpu.dimension_semantics<parallel>], iteration_bounds = array<i64: 2>, scalar_prefetch = 0 : i64, scratch_operands = 2 : i64, tpu.core_type = #tpu.core_type<tc>, window_params = [{transform_indices = @transform_0, window_bounds = array<i64: 1, 4, 256>}, {pipeline_mode = #tpu.pipeline_mode<synchronous>, transform_indices = @transform_1, window_bounds = array<i64: 9, 256>}, {pipeline_mode = #tpu.pipeline_mode<synchronous>, transform_indices = @transform_2, window_bounds = array<i64: 4, 37>}, {pipeline_mode = #tpu.pipeline_mode<synchronous>, transform_indices = @transform_3, window_bounds = array<i64: 8, 37>}, {transform_indices = @transform_4, window_bounds = array<i64: 1, 8, 256>}]} {
    %c0 = arith.constant 0 : index
    %c0_0 = arith.constant 0 : index
    %0 = vector.load %arg2[%c0, %c0_0] : memref<9x256xf32, #tpu.memory_space<vmem>>, vector<1x256xf32>
    %c1 = arith.constant 1 : index
    %c0_1 = arith.constant 0 : index
    %1 = vector.load %arg2[%c1, %c0_1] : memref<9x256xf32, #tpu.memory_space<vmem>>, vector<1x256xf32>
    %c2 = arith.constant 2 : index
    %c0_2 = arith.constant 0 : index
    %2 = vector.load %arg2[%c2, %c0_2] : memref<9x256xf32, #tpu.memory_space<vmem>>, vector<1x256xf32>
    %c3 = arith.constant 3 : index
    %c0_3 = arith.constant 0 : index
    %3 = vector.load %arg2[%c3, %c0_3] : memref<9x256xf32, #tpu.memory_space<vmem>>, vector<1x256xf32>
    %c4 = arith.constant 4 : index
    %c0_4 = arith.constant 0 : index
    %4 = vector.load %arg2[%c4, %c0_4] : memref<9x256xf32, #tpu.memory_space<vmem>>, vector<1x256xf32>
    %c5 = arith.constant 5 : index
    %c0_5 = arith.constant 0 : index
    %5 = vector.load %arg2[%c5, %c0_5] : memref<9x256xf32, #tpu.memory_space<vmem>>, vector<1x256xf32>
    %c6 = arith.constant 6 : index
    %c0_6 = arith.constant 0 : index
    %6 = vector.load %arg2[%c6, %c0_6] : memref<9x256xf32, #tpu.memory_space<vmem>>, vector<1x256xf32>
    %c7 = arith.constant 7 : index
    %c0_7 = arith.constant 0 : index
    %7 = vector.load %arg2[%c7, %c0_7] : memref<9x256xf32, #tpu.memory_space<vmem>>, vector<1x256xf32>
    %c8 = arith.constant 8 : index
    %c0_8 = arith.constant 0 : index
    %8 = vector.load %arg2[%c8, %c0_8] : memref<9x256xf32, #tpu.memory_space<vmem>>, vector<1x256xf32>
    %cst = arith.constant 1.000000e+00 : f32
    %9 = vector.broadcast %cst : f32 to vector<1x256xf32>
    %c0_9 = arith.constant 0 : index
    %c0_10 = arith.constant 0 : index
    %c0_11 = arith.constant 0 : index
    %10 = vector.load %arg1[%c0_9, %c0_10, %c0_11] : memref<1x4x256xf32, #tpu.memory_space<vmem>>, vector<1x4x256xf32>
    %11 = vector.shape_cast %10 : vector<1x4x256xf32> to vector<4x256xf32>
    %c17_i32 = arith.constant 17 : i32
    %12 = tpu.dynamic_rotate %11 by %c17_i32 dim 1 : vector<4x256xf32>, i32 -> vector<4x256xf32>
    %13 = vector.broadcast %0 : vector<1x256xf32> to vector<4x256xf32>
    %14 = arith.mulf %12, %13 : vector<4x256xf32>
    %c0_12 = arith.constant 0 : index
    %c0_13 = arith.constant 0 : index
    %15 = vector.load %arg6[%c0_12, %c0_13] : memref<37x256xf32, #tpu.memory_space<vmem>>, vector<4x256xf32>
    tpu.vector_store %arg6[%c0_12, %c0_13], %14 {strides = array<i32>} : memref<37x256xf32, #tpu.memory_space<vmem>>, vector<4x256xf32>,
    %c16_i32 = arith.constant 16 : i32
    %16 = tpu.dynamic_rotate %11 by %c16_i32 dim 1 : vector<4x256xf32>, i32 -> vector<4x256xf32>
    %17 = vector.broadcast %1 : vector<1x256xf32> to vector<4x256xf32>
    %18 = arith.mulf %16, %17 : vector<4x256xf32>
    %c4_14 = arith.constant 4 : index
    %c0_15 = arith.constant 0 : index
    %19 = vector.load %arg6[%c4_14, %c0_15] : memref<37x256xf32, #tpu.memory_space<vmem>>, vector<4x256xf32>
    tpu.vector_store %arg6[%c4_14, %c0_15], %18 {strides = array<i32>} : memref<37x256xf32, #tpu.memory_space<vmem>>, vector<4x256xf32>,
    %c15_i32 = arith.constant 15 : i32
    %20 = tpu.dynamic_rotate %11 by %c15_i32 dim 1 : vector<4x256xf32>, i32 -> vector<4x256xf32>
    %21 = vector.broadcast %2 : vector<1x256xf32> to vector<4x256xf32>
    %22 = arith.mulf %20, %21 : vector<4x256xf32>
    %c8_16 = arith.constant 8 : index
    %c0_17 = arith.constant 0 : index
    %23 = vector.load %arg6[%c8_16, %c0_17] : memref<37x256xf32, #tpu.memory_space<vmem>>, vector<4x256xf32>
    tpu.vector_store %arg6[%c8_16, %c0_17], %22 {strides = array<i32>} : memref<37x256xf32, #tpu.memory_space<vmem>>, vector<4x256xf32>,
    %c1_i32 = arith.constant 1 : i32
    %24 = tpu.dynamic_rotate %11 by %c1_i32 dim 1 : vector<4x256xf32>, i32 -> vector<4x256xf32>
    %25 = vector.broadcast %3 : vector<1x256xf32> to vector<4x256xf32>
    %26 = arith.mulf %24, %25 : vector<4x256xf32>
    %c12 = arith.constant 12 : index
    %c0_18 = arith.constant 0 : index
    %27 = vector.load %arg6[%c12, %c0_18] : memref<37x256xf32, #tpu.memory_space<vmem>>, vector<4x256xf32>
    tpu.vector_store %arg6[%c12, %c0_18], %26 {strides = array<i32>} : memref<37x256xf32, #tpu.memory_space<vmem>>, vector<4x256xf32>,
    %28 = vector.broadcast %4 : vector<1x256xf32> to vector<4x256xf32>
    %29 = arith.mulf %11, %28 : vector<4x256xf32>
    %c16 = arith.constant 16 : index
    %c0_19 = arith.constant 0 : index
    %30 = vector.load %arg6[%c16, %c0_19] : memref<37x256xf32, #tpu.memory_space<vmem>>, vector<4x256xf32>
    tpu.vector_store %arg6[%c16, %c0_19], %29 {strides = array<i32>} : memref<37x256xf32, #tpu.memory_space<vmem>>, vector<4x256xf32>,
    %c255_i32 = arith.constant 255 : i32
    %31 = tpu.dynamic_rotate %11 by %c255_i32 dim 1 : vector<4x256xf32>, i32 -> vector<4x256xf32>
    %32 = vector.broadcast %5 : vector<1x256xf32> to vector<4x256xf32>
    %33 = arith.mulf %31, %32 : vector<4x256xf32>
    %c20 = arith.constant 20 : index
    %c0_20 = arith.constant 0 : index
    %34 = vector.load %arg6[%c20, %c0_20] : memref<37x256xf32, #tpu.memory_space<vmem>>, vector<4x256xf32>
    tpu.vector_store %arg6[%c20, %c0_20], %33 {strides = array<i32>} : memref<37x256xf32, #tpu.memory_space<vmem>>, vector<4x256xf32>,
    %c241_i32 = arith.constant 241 : i32
    %35 = tpu.dynamic_rotate %11 by %c241_i32 dim 1 : vector<4x256xf32>, i32 -> vector<4x256xf32>
    %36 = vector.broadcast %6 : vector<1x256xf32> to vector<4x256xf32>
    %37 = arith.mulf %35, %36 : vector<4x256xf32>
    %c24 = arith.constant 24 : index
    %c0_21 = arith.constant 0 : index
    %38 = vector.load %arg6[%c24, %c0_21] : memref<37x256xf32, #tpu.memory_space<vmem>>, vector<4x256xf32>
    tpu.vector_store %arg6[%c24, %c0_21], %37 {strides = array<i32>} : memref<37x256xf32, #tpu.memory_space<vmem>>, vector<4x256xf32>,
    %c240_i32 = arith.constant 240 : i32
    %39 = tpu.dynamic_rotate %11 by %c240_i32 dim 1 : vector<4x256xf32>, i32 -> vector<4x256xf32>
    %40 = vector.broadcast %7 : vector<1x256xf32> to vector<4x256xf32>
    %41 = arith.mulf %39, %40 : vector<4x256xf32>
    %c28 = arith.constant 28 : index
    %c0_22 = arith.constant 0 : index
    %42 = vector.load %arg6[%c28, %c0_22] : memref<37x256xf32, #tpu.memory_space<vmem>>, vector<4x256xf32>
    tpu.vector_store %arg6[%c28, %c0_22], %41 {strides = array<i32>} : memref<37x256xf32, #tpu.memory_space<vmem>>, vector<4x256xf32>,
    %c239_i32 = arith.constant 239 : i32
    %43 = tpu.dynamic_rotate %11 by %c239_i32 dim 1 : vector<4x256xf32>, i32 -> vector<4x256xf32>
    %44 = vector.broadcast %8 : vector<1x256xf32> to vector<4x256xf32>
    %45 = arith.mulf %43, %44 : vector<4x256xf32>
    %c32 = arith.constant 32 : index
    %c0_23 = arith.constant 0 : index
    %46 = vector.load %arg6[%c32, %c0_23] : memref<37x256xf32, #tpu.memory_space<vmem>>, vector<4x256xf32>
    tpu.vector_store %arg6[%c32, %c0_23], %45 {strides = array<i32>} : memref<37x256xf32, #tpu.memory_space<vmem>>, vector<4x256xf32>,
    %c36 = arith.constant 36 : index
    %c0_24 = arith.constant 0 : index
    %47 = vector.load %arg6[%c36, %c0_24] : memref<37x256xf32, #tpu.memory_space<vmem>>, vector<1x256xf32>
    tpu.vector_store %arg6[%c36, %c0_24], %9 {strides = array<i32>} : memref<37x256xf32, #tpu.memory_space<vmem>>, vector<1x256xf32>,
    %c0_25 = arith.constant 0 : index
    %c0_26 = arith.constant 0 : index
    %48 = vector.load %arg3[%c0_25, %c0_26] : memref<4x37xf32, #tpu.memory_space<vmem>>, vector<4x37xf32>
    %c0_27 = arith.constant 0 : index
    %c0_28 = arith.constant 0 : index
    %49 = vector.load %arg6[%c0_27, %c0_28] : memref<37x256xf32, #tpu.memory_space<vmem>>, vector<37x256xf32>
    %cst_29 = arith.constant dense<0.000000e+00> : vector<4x256xf32>
    %50 = tpu.matmul %48, %49, %cst_29 {dimension_numbers = #tpu.dot_dimension_numbers<[1], [0], [0], [1], [0, 0, 1, 1], [], []>, precision = #tpu.contract_precision<fp32>} : vector<4x37xf32>, vector<37x256xf32>, vector<4x256xf32> -> vector<4x256xf32>
    %cst_30 = arith.constant 0.000000e+00 : f32
    %cst_31 = arith.constant 6.000000e+00 : f32
    %51 = vector.broadcast %cst_30 : f32 to vector<4x256xf32>
    %52 = arith.maximumf %51, %50 : vector<4x256xf32>
    %53 = vector.broadcast %cst_31 : f32 to vector<4x256xf32>
    %54 = arith.minimumf %53, %52 : vector<4x256xf32>
    %c17_i32_32 = arith.constant 17 : i32
    %55 = tpu.dynamic_rotate %54 by %c17_i32_32 dim 1 : vector<4x256xf32>, i32 -> vector<4x256xf32>
    %56 = vector.broadcast %0 : vector<1x256xf32> to vector<4x256xf32>
    %57 = arith.mulf %55, %56 : vector<4x256xf32>
    %c0_33 = arith.constant 0 : index
    %c0_34 = arith.constant 0 : index
    %58 = vector.load %arg7[%c0_33, %c0_34] : memref<37x256xf32, #tpu.memory_space<vmem>>, vector<4x256xf32>
    tpu.vector_store %arg7[%c0_33, %c0_34], %57 {strides = array<i32>} : memref<37x256xf32, #tpu.memory_space<vmem>>, vector<4x256xf32>,
    %c16_i32_35 = arith.constant 16 : i32
    %59 = tpu.dynamic_rotate %54 by %c16_i32_35 dim 1 : vector<4x256xf32>, i32 -> vector<4x256xf32>
    %60 = vector.broadcast %1 : vector<1x256xf32> to vector<4x256xf32>
    %61 = arith.mulf %59, %60 : vector<4x256xf32>
    %c4_36 = arith.constant 4 : index
    %c0_37 = arith.constant 0 : index
    %62 = vector.load %arg7[%c4_36, %c0_37] : memref<37x256xf32, #tpu.memory_space<vmem>>, vector<4x256xf32>
    tpu.vector_store %arg7[%c4_36, %c0_37], %61 {strides = array<i32>} : memref<37x256xf32, #tpu.memory_space<vmem>>, vector<4x256xf32>,
    %c15_i32_38 = arith.constant 15 : i32
    %63 = tpu.dynamic_rotate %54 by %c15_i32_38 dim 1 : vector<4x256xf32>, i32 -> vector<4x256xf32>
    %64 = vector.broadcast %2 : vector<1x256xf32> to vector<4x256xf32>
    %65 = arith.mulf %63, %64 : vector<4x256xf32>
    %c8_39 = arith.constant 8 : index
    %c0_40 = arith.constant 0 : index
    %66 = vector.load %arg7[%c8_39, %c0_40] : memref<37x256xf32, #tpu.memory_space<vmem>>, vector<4x256xf32>
    tpu.vector_store %arg7[%c8_39, %c0_40], %65 {strides = array<i32>} : memref<37x256xf32, #tpu.memory_space<vmem>>, vector<4x256xf32>,
    %c1_i32_41 = arith.constant 1 : i32
    %67 = tpu.dynamic_rotate %54 by %c1_i32_41 dim 1 : vector<4x256xf32>, i32 -> vector<4x256xf32>
    %68 = vector.broadcast %3 : vector<1x256xf32> to vector<4x256xf32>
    %69 = arith.mulf %67, %68 : vector<4x256xf32>
    %c12_42 = arith.constant 12 : index
    %c0_43 = arith.constant 0 : index
    %70 = vector.load %arg7[%c12_42, %c0_43] : memref<37x256xf32, #tpu.memory_space<vmem>>, vector<4x256xf32>
    tpu.vector_store %arg7[%c12_42, %c0_43], %69 {strides = array<i32>} : memref<37x256xf32, #tpu.memory_space<vmem>>, vector<4x256xf32>,
    %71 = vector.broadcast %4 : vector<1x256xf32> to vector<4x256xf32>
    %72 = arith.mulf %54, %71 : vector<4x256xf32>
    %c16_44 = arith.constant 16 : index
    %c0_45 = arith.constant 0 : index
    %73 = vector.load %arg7[%c16_44, %c0_45] : memref<37x256xf32, #tpu.memory_space<vmem>>, vector<4x256xf32>
    tpu.vector_store %arg7[%c16_44, %c0_45], %72 {strides = array<i32>} : memref<37x256xf32, #tpu.memory_space<vmem>>, vector<4x256xf32>,
    %c255_i32_46 = arith.constant 255 : i32
    %74 = tpu.dynamic_rotate %54 by %c255_i32_46 dim 1 : vector<4x256xf32>, i32 -> vector<4x256xf32>
    %75 = vector.broadcast %5 : vector<1x256xf32> to vector<4x256xf32>
    %76 = arith.mulf %74, %75 : vector<4x256xf32>
    %c20_47 = arith.constant 20 : index
    %c0_48 = arith.constant 0 : index
    %77 = vector.load %arg7[%c20_47, %c0_48] : memref<37x256xf32, #tpu.memory_space<vmem>>, vector<4x256xf32>
    tpu.vector_store %arg7[%c20_47, %c0_48], %76 {strides = array<i32>} : memref<37x256xf32, #tpu.memory_space<vmem>>, vector<4x256xf32>,
    %c241_i32_49 = arith.constant 241 : i32
    %78 = tpu.dynamic_rotate %54 by %c241_i32_49 dim 1 : vector<4x256xf32>, i32 -> vector<4x256xf32>
    %79 = vector.broadcast %6 : vector<1x256xf32> to vector<4x256xf32>
    %80 = arith.mulf %78, %79 : vector<4x256xf32>
    %c24_50 = arith.constant 24 : index
    %c0_51 = arith.constant 0 : index
    %81 = vector.load %arg7[%c24_50, %c0_51] : memref<37x256xf32, #tpu.memory_space<vmem>>, vector<4x256xf32>
    tpu.vector_store %arg7[%c24_50, %c0_51], %80 {strides = array<i32>} : memref<37x256xf32, #tpu.memory_space<vmem>>, vector<4x256xf32>,
    %c240_i32_52 = arith.constant 240 : i32
    %82 = tpu.dynamic_rotate %54 by %c240_i32_52 dim 1 : vector<4x256xf32>, i32 -> vector<4x256xf32>
    %83 = vector.broadcast %7 : vector<1x256xf32> to vector<4x256xf32>
    %84 = arith.mulf %82, %83 : vector<4x256xf32>
    %c28_53 = arith.constant 28 : index
    %c0_54 = arith.constant 0 : index
    %85 = vector.load %arg7[%c28_53, %c0_54] : memref<37x256xf32, #tpu.memory_space<vmem>>, vector<4x256xf32>
    tpu.vector_store %arg7[%c28_53, %c0_54], %84 {strides = array<i32>} : memref<37x256xf32, #tpu.memory_space<vmem>>, vector<4x256xf32>,
    %c239_i32_55 = arith.constant 239 : i32
    %86 = tpu.dynamic_rotate %54 by %c239_i32_55 dim 1 : vector<4x256xf32>, i32 -> vector<4x256xf32>
    %87 = vector.broadcast %8 : vector<1x256xf32> to vector<4x256xf32>
    %88 = arith.mulf %86, %87 : vector<4x256xf32>
    %c32_56 = arith.constant 32 : index
    %c0_57 = arith.constant 0 : index
    %89 = vector.load %arg7[%c32_56, %c0_57] : memref<37x256xf32, #tpu.memory_space<vmem>>, vector<4x256xf32>
    tpu.vector_store %arg7[%c32_56, %c0_57], %88 {strides = array<i32>} : memref<37x256xf32, #tpu.memory_space<vmem>>, vector<4x256xf32>,
    %c36_58 = arith.constant 36 : index
    %c0_59 = arith.constant 0 : index
    %90 = vector.load %arg7[%c36_58, %c0_59] : memref<37x256xf32, #tpu.memory_space<vmem>>, vector<1x256xf32>
    tpu.vector_store %arg7[%c36_58, %c0_59], %9 {strides = array<i32>} : memref<37x256xf32, #tpu.memory_space<vmem>>, vector<1x256xf32>,
    %c0_60 = arith.constant 0 : index
    %c0_61 = arith.constant 0 : index
    %91 = vector.load %arg4[%c0_60, %c0_61] : memref<8x37xf32, #tpu.memory_space<vmem>>, vector<8x37xf32>
    %c0_62 = arith.constant 0 : index
    %c0_63 = arith.constant 0 : index
    %92 = vector.load %arg7[%c0_62, %c0_63] : memref<37x256xf32, #tpu.memory_space<vmem>>, vector<37x256xf32>
    %cst_64 = arith.constant dense<0.000000e+00> : vector<8x256xf32>
    %93 = tpu.matmul %91, %92, %cst_64 {dimension_numbers = #tpu.dot_dimension_numbers<[1], [0], [0], [1], [0, 0, 1, 1], [], []>, precision = #tpu.contract_precision<fp32>} : vector<8x37xf32>, vector<37x256xf32>, vector<8x256xf32> -> vector<8x256xf32>
    %c0_65 = arith.constant 0 : index
    %c0_66 = arith.constant 0 : index
    %c0_67 = arith.constant 0 : index
    %94 = vector.load %arg5[%c0_65, %c0_66, %c0_67] : memref<1x8x256xf32, #tpu.memory_space<vmem>>, vector<1x8x256xf32>
    %95 = vector.shape_cast %94 : vector<1x8x256xf32> to vector<8x256xf32>
    %96 = vector.shape_cast %93 : vector<8x256xf32> to vector<1x8x256xf32>
    tpu.vector_store %arg5[%c0_65, %c0_66, %c0_67], %96 {strides = array<i32>} : memref<1x8x256xf32, #tpu.memory_space<vmem>>, vector<1x8x256xf32>,
    return
  }
  func.func @transform_0(%arg0: i32) -> (i32, i32, i32) {
    %c0_i32 = arith.constant 0 : i32
    %c0_i32_0 = arith.constant 0 : i32
    %c0_i32_1 = arith.constant 0 : i32
    return %arg0, %c0_i32, %c0_i32_0 : i32, i32, i32
  }
  func.func @transform_1(%arg0: i32) -> (i32, i32) {
    %c0_i32 = arith.constant 0 : i32
    %c0_i32_0 = arith.constant 0 : i32
    %c0_i32_1 = arith.constant 0 : i32
    return %c0_i32, %c0_i32_0 : i32, i32
  }
  func.func @transform_2(%arg0: i32) -> (i32, i32) {
    %c0_i32 = arith.constant 0 : i32
    %c0_i32_0 = arith.constant 0 : i32
    %c0_i32_1 = arith.constant 0 : i32
    return %c0_i32, %c0_i32_0 : i32, i32
  }
  func.func @transform_3(%arg0: i32) -> (i32, i32) {
    %c0_i32 = arith.constant 0 : i32
    %c0_i32_0 = arith.constant 0 : i32
    %c0_i32_1 = arith.constant 0 : i32
    return %c0_i32, %c0_i32_0 : i32, i32
  }
  func.func @transform_4(%arg0: i32) -> (i32, i32, i32) {
    %c0_i32 = arith.constant 0 : i32
    %c0_i32_0 = arith.constant 0 : i32
    %c0_i32_1 = arith.constant 0 : i32
    return %arg0, %c0_i32, %c0_i32_0 : i32, i32, i32
  }
}

</mosaic_0001>

<bundles_post_ra>
// kernel: res_block.1
= control target key start
LH: loop header
LB: loop body
LE: loop exit
PB: predicated region body
PF: predicated region fallthrough
CT: control target
= control target key end

     0   :  { %s1998_s15 = smov 0   ;;  %s2500_s0 = inlined_call_operand.vmem [shape: f32[2,4,256], index: 0, kind: input, shape index: {}]   ;;  %s2501_s1 = inlined_call_operand.vmem [shape: f32[9,256], index: 1, kind: input, shape index: {}]   ;;  %s2502_s2 = inlined_call_operand.vmem [shape: f32[4,37], index: 2, kind: input, shape index: {}]   ;;  %s2503_s3 = inlined_call_operand.vmem [shape: f32[8,37], index: 3, kind: input, shape index: {}]   ;;  %s2504_s4 = inlined_call_operand.vmem [shape: f32[2,8,256], index: 4, kind: output, shape index: {}]  }
   0x1 LB: > { %s1799_s16 = sadd.s32 4294967295, %s1961_s15   ;;  %p1803_p0 = scmp.ge.s32.totalorder %s1961_s15, 1  ;;  %s1961_s15 = sphi %s1998_s15, %s14_s15  }
   0x2   : > { %p162_p1 = scmp.lt.s32.totalorder %s1961_s15, 3 }
   0x4   : > { %p163_p2 = pnand %p1803_p0, %p162_p1 }
   0x5   : > { %p188_p3 = scmp.lt.s32.totalorder (!%p163_p2), %s1799_s16, 1  ;;  %v223_v0 = vlaneseq (!%p163_p2)  ;;  %s1963_s21 = smov (!%p163_p2), 1   ;;  %v1811_v6 = vld [vmem:[%s2501_s1 + $0x4] ss:$8 sm:$0x3] (!%p163_p2)  ;;  %v1968_v12 = vmov (!%p163_p2), 1.0  }
   0x6   : > { %166 = sbr.rel (%p163_p2) target bundleno = 868 (0x364), region = 36  ;;  %s1964_s22 = smov (!%p163_p2), 16   ;;  %v1972_v13 = vmov (!%p163_p2), 0.0   ;;  %v1810_v15 = vld [vmem:[%s2501_s1 + $0x3] ss:$8 sm:$0x3] (!%p163_p2) }
   0x7   : > { %v230_v1 = vshrl.u32 (!%p163_p2), %v223_v0, 7  ;;  %s1965_s25 = smov (!%p163_p2), 17   ;;  %s1966_s26 = smov (!%p163_p2), 15   ;;  %vm442_vm0 = vcmp.lt.s32.totalorder (!%p163_p2), %v223_v0, 256  ;;  %543 = vmatprep.mubr.f32.mxu0 (!%p163_p2), %v1972_v13  ;;  %1247 = vmatprep.mubr.f32.mxu1 (!%p163_p2), %v1972_v13  ;;  %v2045_v14 = vand.u32 (!%p163_p2), 127, %v223_v0  ;;  %vm458_vm7 = vcmask (!%p163_p2), 302080  }
   0x8   : > { %s1967_s27 = smov (!%p163_p2), 127   ;;  %445 = vst.msk [vmem:[#allocation2 + $0x44] ss:$8 sm:$0x3] (!%p163_p2), %vm442_vm0, %v1968_v12  ;;  %s1969_s28 = smov (!%p163_p2), 112   ;;  %vm462_vm10 = vcmask (!%p163_p2), 1044480  }
   0x9   : > { %v2012_v3 = vsub.s32 (!%p163_p2), 0, %v230_v1  ;;  %v2014_v4 = vsub.s32 (!%p163_p2), 1, %v230_v1  ;;  %1151 = vst.msk [vmem:[#allocation3 + $0x44] ss:$8 sm:$0x3] (!%p163_p2), %vm442_vm0, %v1968_v12  ;;  %s1970_s29 = smov (!%p163_p2), 113  }
   0xa   : > { %s1971_s30 = smov (!%p163_p2), 111   ;;  %vm297_vm1 = vcmp.lt.s32.totalorder (!%p163_p2), %v2045_v14, 1  ;;  %v198_v20 = vld [vmem:[%s2501_s1] ss:$8 sm:$0x3] (!%p163_p2)  ;;  %vm225_vm2 = vcmp.lt.s32.totalorder (!%p163_p2), %v2045_v14, 17 }
   0xb   : > { %v2022_v7 = vrot.slane (!%p163_p2), %v1811_v6, %v2012_v3  ;;  %v2025_v8 = vrot.slane (!%p163_p2), %v1811_v6, %v2014_v4  ;;  %v2052_v18 = vrot.slane (!%p163_p2), %v1810_v15, %v2012_v3  ;;  %v2055_v19 = vrot.slane (!%p163_p2), %v1810_v15, %v2014_v4  ;;  %v1808_v21 = vld [vmem:[%s2501_s1 + $0x1] ss:$8 sm:$0x3] (!%p163_p2)  ;;  %v1809_v28 = vld [vmem:[%s2501_s1 + $0x2] ss:$8 sm:$0x3] (!%p163_p2) }
   0xc   : > { %vm247_vm3 = vcmp.lt.s32.totalorder (!%p163_p2), %v2045_v14, 16  ;;  %v2070_v26 = vrot.slane (!%p163_p2), %v198_v20, %v2012_v3  ;;  %v2073_v27 = vrot.slane (!%p163_p2), %v198_v20, %v2014_v4  ;;  %v2081_v31 = vrot.slane (!%p163_p2), %v1808_v21, %v2012_v3  ;;  %v1812_v47 = vld [vmem:[%s2501_s1 + $0x5] ss:$8 sm:$0x3] (!%p163_p2)  ;;  %v447_v63 = vld [vmem:[%s2502_s2] sm:$0xf] (!%p163_p2) }
   0xd   : > { %s2514_s16 = smov (!%p188_p3, %s1799_s16), 1  ;;  %v332_v9 = vcombine.low %v2022_v7, %v2025_v8  ;;  %v2084_v32 = vrot.slane %v1808_v21, %v2014_v4  ;;  %vm275_vm4 = vcmp.lt.s32.totalorder %v2045_v14, 15  ;;  %v2088_v37 = vrot.slane %v1809_v28, %v2012_v3  ;;  %v1814_v58 = vld [vmem:[%s2501_s1 + $0x7] ss:$8 sm:$0x3] }
   0xe   : > { %s1818_s17 = sshll.u32 %s2514_s16, 3  ;;  %v2091_v38 = vrot.slane %v1809_v28, %v2014_v4  ;;  %vm344_vm5 = vcmp.lt.s32.totalorder %v2045_v14, 127  ;;  %v2116_v56 = vrot.slane %v1812_v47, %v2012_v3  ;;  %v2119_v57 = vrot.slane %v1812_v47, %v2014_v4  ;;  %v1813_v6 = vld [vmem:[%s2501_s1 + $0x6] ss:$8 sm:$0x3] }
   0xf   : > { %s192_s20 = scalar_lea.vmem %s2500_s0, %s1818_s17  ;;  %vm394_vm6 = vcmp.lt.s32.totalorder %v2045_v14, 112  ;;  %v1815_v15 = vld [vmem:[%s2501_s1 + $0x10] ss:$8 sm:$0x3]  ;;  %vm372_vm8 = vcmp.lt.s32.totalorder %v2045_v14, 113  ;;  %vm422_vm9 = vcmp.lt.s32.totalorder %v2045_v14, 111 }
  0x10   : > { %v215_v2 = vld [vmem:[%s192_s20] sm:$0xff] }
  0x11   : > { %293 = vrot.lane.b32.xlu1 %v215_v2, %s1963_s21  ;;  %243 = vrot.lane.b32.xlu0 %v215_v2, %s1964_s22  ;;  %v217_v5 = vcombine.high %v215_v2, %v215_v2  ;;  %v334_v10 = vmul.f32 %v332_v9, %v215_v2 }
  0x13   : > { %v336_v11 = vcombine.high %v334_v10, %v334_v10  ;;  %338 = vst [vmem:[#allocation2 + $0x20] sm:$0xf] %v334_v10 }
  0x15   : > { %219 = vrot.lane.b32.xlu0 %v215_v2, %s1965_s25  ;;  %295 = vrot.lane.b32.xlu1 %v217_v5, %s1963_s21  ;;  %339 = vst [vmem:[#allocation2 + $0x28] sm:$0xf] %v336_v11 }
  0x19   : > { %221 = vrot.lane.b32.xlu1 %v217_v5, %s1965_s25  ;;  %245 = vrot.lane.b32.xlu0 %v217_v5, %s1964_s22 }
  0x1d   : > { %273 = vrot.lane.b32.xlu1 %v217_v5, %s1966_s26  ;;  %271 = vrot.lane.b32.xlu0 %v215_v2, %s1966_s26 }
  0x21   : > { %342 = vrot.lane.b32.xlu1 %v217_v5, %s1967_s27  ;;  %340 = vrot.lane.b32.xlu0 %v215_v2, %s1967_s27 }
  0x25   : > { %392 = vrot.lane.b32.xlu1 %v217_v5, %s1969_s28  ;;  %390 = vrot.lane.b32.xlu0 %v215_v2, %s1969_s28 }
  0x29   : > { %370 = vrot.lane.b32.xlu1 %v217_v5, %s1970_s29  ;;  %368 = vrot.lane.b32.xlu0 %v215_v2, %s1970_s29 }
  0x2d   : > { %420 = vrot.lane.b32.xlu1 %v217_v5, %s1971_s30  ;;  %418 = vrot.lane.b32.xlu0 %v215_v2, %s1971_s30  ;;  %v2135_v2 = vrot.slane %v1814_v58, %v2012_v3  ;;  %v2138_v5 = vrot.slane %v1814_v58, %v2014_v4 }
  0x83   : > { %v294_v16 = vpop.permute.xlu1 %293  ;;  %v244_v17 = vpop.permute.xlu0 %243 }
  0x87   : > { %v220_v22 = vpop.permute.xlu0 %219  ;;  %v296_v23 = vpop.permute.xlu1 %295 }
  0x88   : > { %v298_v24 = vsel %vm297_vm1, %v294_v16, %v296_v23  ;;  %v299_v25 = vsel %vm297_vm1, %v296_v23, %v294_v16  ;;  %v460_v16 = vsel %vm458_vm7, %v447_v63, 0 }
  0x89   : > { %v311_v29 = vmul.f32 %v2052_v18, %v299_v25  ;;  %v312_v30 = vmul.f32 %v2055_v19, %v298_v24  ;;  %v2155_v24 = vrot.slane %v1813_v6, %v2012_v3  ;;  %v2158_v25 = vrot.slane %v1813_v6, %v2014_v4 }
  0x8b   : > { %v315_v33 = vrot.slane %v311_v29, 4  ;;  %v316_v34 = vrot.slane %v312_v30, 4  ;;  %v222_v35 = vpop.permute.xlu1 %221  ;;  %v246_v36 = vpop.permute.xlu0 %245  ;;  %v2162_v30 = vrot.slane %v1815_v15, %v2012_v3 }
  0x8c   : > { %v226_v39 = vsel %vm225_vm2, %v220_v22, %v222_v35  ;;  %v227_v40 = vsel %vm225_vm2, %v222_v35, %v220_v22  ;;  %v248_v41 = vsel %vm247_vm3, %v244_v17, %v246_v36  ;;  %v249_v42 = vsel %vm247_vm3, %v246_v36, %v244_v17 }
  0x8d   : > { %319 = vst [vmem:[#allocation2 + $0x10] sm:$0xf0] %v315_v33  ;;  %320 = vst [vmem:[#allocation2 + $0x18] sm:$0xf0] %v316_v34  ;;  %v239_v43 = vmul.f32 %v2070_v26, %v227_v40  ;;  %v240_v44 = vmul.f32 %v2073_v27, %v226_v39  ;;  %v261_v45 = vmul.f32 %v2081_v31, %v249_v42  ;;  %v2164_v34 = vand.u32 4294901760, %v460_v16 }
  0x8e   : > { %v262_v46 = vmul.f32 %v2084_v32, %v248_v41 }
  0x8f   : > { %241 = vst [vmem:[#allocation2] sm:$0xf] %v239_v43  ;;  %242 = vst [vmem:[#allocation2 + $0x8] sm:$0xf] %v240_v44  ;;  %v265_v48 = vrot.slane %v261_v45, 4  ;;  %v274_v50 = vpop.permute.xlu1 %273  ;;  %v272_v51 = vpop.permute.xlu0 %271 }
  0x90   : > { %v266_v49 = vrot.slane %v262_v46, 4  ;;  %v276_v52 = vsel %vm275_vm4, %v272_v51, %v274_v50  ;;  %v277_v53 = vsel %vm275_vm4, %v274_v50, %v272_v51 }
  0x91   : > { %269 = vst [vmem:[#allocation2] sm:$0xf0] %v265_v48  ;;  %v289_v54 = vmul.f32 %v2088_v37, %v277_v53  ;;  %v290_v55 = vmul.f32 %v2091_v38, %v276_v52 }
  0x92   : > { %270 = vst [vmem:[#allocation2 + $0x8] sm:$0xf0] %v266_v49  ;;  %v2175_v49 = vrot.slane %v1815_v15, %v2014_v4 }
  0x93   : > { %291 = vst [vmem:[#allocation2 + $0x10] sm:$0xf] %v289_v54  ;;  %292 = vst [vmem:[#allocation2 + $0x18] sm:$0xf] %v290_v55  ;;  %v343_v59 = vpop.permute.xlu1 %342  ;;  %v341_v60 = vpop.permute.xlu0 %340  ;;  %v2183_v54 = vsub.f32 %v460_v16, %v2164_v34 }
  0x94   : > { %v345_v61 = vsel %vm344_vm5, %v341_v60, %v343_v59  ;;  %v346_v62 = vsel %vm344_vm5, %v343_v59, %v341_v60 }
  0x95   : > { %v358_v0 = vmul.f32 %v2116_v56, %v345_v61  ;;  %v359_v1 = vmul.f32 %v2119_v57, %v346_v62 }
  0x97   : > { %v362_v9 = vrot.slane %v358_v0, 4  ;;  %v363_v10 = vrot.slane %v359_v1, 4  ;;  %v393_v11 = vpop.permute.xlu1 %392  ;;  %v391_v12 = vpop.permute.xlu0 %390 }
  0x98   : > { %v395_v17 = vsel %vm394_vm6, %v391_v12, %v393_v11  ;;  %v396_v20 = vsel %vm394_vm6, %v393_v11, %v391_v12  ;;  %v448_v28 = vld [vmem:[#allocation2] sm:$0xff]  ;;  %v2507_v12 = vand.u32 4294901760, %v2183_v54 }
  0x99   : > { %v449_v21 = vld [vmem:[#allocation2 + $0x8] sm:$0xff]  ;;  %366 = vst [vmem:[#allocation2 + $0x20] sm:$0xf0] %v362_v9  ;;  %367 = vst [vmem:[#allocation2 + $0x28] sm:$0xf0] %v363_v10  ;;  %v408_v22 = vmul.f32 %v2135_v2, %v395_v17  ;;  %v409_v23 = vmul.f32 %v2138_v5, %v396_v20  ;;  %v471_v45 = vand.u32 4294901760, %v448_v28 }
  0x9a   : > { %v451_v29 = vld [vmem:[#allocation2 + $0x18] sm:$0xff]  ;;  %v450_v33 = vld [vmem:[#allocation2 + $0x10] sm:$0xff]  ;;  %v469_v41 = vand.u32 4294901760, %v449_v21 }
  0x9b   : > { %v412_v35 = vrot.slane %v408_v22, 4  ;;  %v413_v36 = vrot.slane %v409_v23, 4  ;;  %v371_v39 = vpop.permute.xlu1 %370  ;;  %v369_v40 = vpop.permute.xlu0 %368  ;;  %v473_v42 = vand.u32 4294901760, %v451_v29  ;;  %v475_v46 = vand.u32 4294901760, %v450_v33 }
  0x9c   : > { %v373_v43 = vsel %vm372_vm8, %v369_v40, %v371_v39  ;;  %v374_v44 = vsel %vm372_vm8, %v371_v39, %v369_v40  ;;  %v2185_v55 = vsub.f32 %v449_v21, %v469_v41  ;;  %v2196_v1 = vsub.f32 %v448_v28, %v471_v45 }
  0x9d   : > { %416 = vst [vmem:[#allocation2 + $0x30] sm:$0xf0] %v412_v35  ;;  %417 = vst [vmem:[#allocation2 + $0x38] sm:$0xf0] %v413_v36  ;;  %v386_v3 = vmul.f32 %v2155_v24, %v373_v43  ;;  %v387_v47 = vmul.f32 %v2158_v25, %v374_v44  ;;  %v2172_v48 = vpack.c.bf16 %v473_v42, %v469_v41 }
  0x9e   : > { %v2177_v50 = vsub.f32 %v451_v29, %v473_v42  ;;  %v2179_v51 = vpack.c.bf16 %v475_v46, %v471_v45  ;;  %v2192_v59 = vsub.f32 %v450_v33, %v475_v46  ;;  %v557_v11 = vand.u32 4294901760, %v2185_v55 }
  0x9f   : > { %388 = vst [vmem:[#allocation2 + $0x30] sm:$0xf] %v386_v3  ;;  %389 = vst [vmem:[#allocation2 + $0x38] sm:$0xf] %v387_v47  ;;  %v421_v52 = vpop.permute.xlu1 %420  ;;  %1821 = vmatprep.subr.bf16.mxu0 %v2172_v48  ;;  %v419_v53 = vpop.permute.xlu0 %418  ;;  %v563_v22 = vand.u32 4294901760, %v2196_v1  ;;  %v547_v35 = vsub.f32 %v2183_v54, %v2507_v12 }
  0xa0   : > { %v423_v58 = vsel %vm422_vm9, %v419_v53, %v421_v52  ;;  %v424_v4 = vsel %vm422_vm9, %v421_v52, %v419_v53  ;;  %1823 = vmatpush1.bf16.msra.mxu0 %v2179_v51  ;;  %v453_v60 = vld [vmem:[#allocation2 + $0x28] sm:$0xff]  ;;  %v452_v61 = vld [vmem:[#allocation2 + $0x20] sm:$0xff]  ;;  %v569_v9 = vand.u32 4294901760, %v2177_v50  ;;  %v575_v15 = vand.u32 4294901760, %v2192_v59 }
  0xa1   : > { %v436_v62 = vmul.f32 %v2162_v30, %v423_v58  ;;  %v437_v63 = vmul.f32 %v2175_v49, %v424_v4  ;;  %v477_v0 = vand.u32 4294901760, %v453_v60  ;;  %v479_v6 = vand.u32 4294901760, %v452_v61 }
  0xa2   : > { %v570_v21 = vsub.f32 %v2177_v50, %v569_v9  ;;  %v558_v33 = vsub.f32 %v2185_v55, %v557_v11  ;;  %v576_v36 = vsub.f32 %v2192_v59, %v575_v15  ;;  %v564_v46 = vsub.f32 %v2196_v1, %v563_v22 }
  0xa3   : > { %438 = vst [vmem:[#allocation2 + $0x40] sm:$0xf] %v436_v62  ;;  %439 = vst [vmem:[#allocation2 + $0x48] sm:$0xf] %v437_v63  ;;  %v2199_v10 = vsub.f32 %v453_v60, %v477_v0  ;;  %v2204_v20 = vsub.f32 %v452_v61, %v479_v6 }
  0xa4   : > { %v571_v45 = vand.u32 4294901760, %v570_v21  ;;  %v577_v62 = vand.u32 4294901760, %v576_v36  ;;  %v559_v63 = vand.u32 4294901760, %v558_v33  ;;  %v565_v21 = vand.u32 4294901760, %v564_v46 }
  0xa5   : > { %v2505_v23 = vand.u32 4294901760, %v2199_v10  ;;  %v2508_v47 = vand.u32 4294901760, %v2204_v20 }
  0xa6   : > { %v455_v16 = vld [vmem:[#allocation2 + $0x38] sm:$0xff]  ;;  %v454_v17 = vld [vmem:[#allocation2 + $0x30] sm:$0xff]  ;;  %v1828_v36 = vpack.c.bf16 %v571_v45, %v559_v63  ;;  %v1838_v63 = vpack.c.bf16 %v2192_v59, %v2196_v1 }
  0xa7   : > { %v481_v28 = vand.u32 4294901760, %v455_v16  ;;  %v483_v29 = vand.u32 4294901760, %v454_v17  ;;  %v582_v3 = vsub.f32 %v2199_v10, %v2505_v23 }
  0xa9   : > { %v2220_v39 = vpack.c.bf16 %v481_v28, %v477_v0  ;;  %v2222_v40 = vsub.f32 %v455_v16, %v481_v28  ;;  %v2224_v41 = vpack.c.bf16 %v483_v29, %v479_v6  ;;  %v2226_v42 = vsub.f32 %v454_v17, %v483_v29 }
  0xaa   : > { %v457_v43 = vld [vmem:[#allocation2 + $0x48] sm:$0x1f]  ;;  %v456_v44 = vld [vmem:[#allocation2 + $0x40] sm:$0x1f]  ;;  %v548_v0 = vand.u32 4294901760, %v547_v35  ;;  %v588_v28 = vsub.f32 %v2204_v20, %v2508_v47  ;;  %v583_v33 = vand.u32 4294901760, %v582_v3 }
  0xab   : > { %1825 = vmatprep.subr.bf16.mxu0 %v2220_v39  ;;  %v467_v52 = vsel %vm462_vm10, %v457_v43, 0  ;;  %v464_v53 = vsel %vm462_vm10, %v456_v44, 0  ;;  %v593_v58 = vand.u32 4294901760, %v2222_v40  ;;  %v2506_v4 = vand.u32 4294901760, %v2226_v42 }
  0xac   : > { %1827 = vmatpush1.bf16.msra.mxu0 %v2224_v41  ;;  %v2241_v60 = vand.u32 4294901760, %v467_v52  ;;  %v2243_v61 = vand.u32 4294901760, %v464_v53  ;;  %v1830_v43 = vpack.c.bf16 %v577_v62, %v565_v21  ;;  %v589_v46 = vand.u32 4294901760, %v588_v28 }
  0xad   : > { %v594_v6 = vsub.f32 %v2222_v40, %v593_v58  ;;  %v600_v16 = vsub.f32 %v2226_v42, %v2506_v4  ;;  %v1836_v62 = vpack.c.bf16 %v2177_v50, %v2185_v55  ;;  %v2511_v50 = vand.u32 4294901760, %v2204_v20 }
  0xae   : > { %486 = vmatprep.subr.mxu0 %v2241_v60  ;;  %v610_v17 = vsub.f32 %v464_v53, %v2243_v61  ;;  %v604_v29 = vsub.f32 %v467_v52, %v2241_v60  ;;  %v2512_v55 = vand.u32 4294901760, %v2226_v42 }
  0xaf   : > { %v595_v35 = vand.u32 4294901760, %v594_v6  ;;  %v601_v44 = vand.u32 4294901760, %v600_v16  ;;  %v2509_v6 = vand.u32 4294901760, %v2183_v54  ;;  %v2510_v16 = vand.u32 4294901760, %v2199_v10 }
  0xb0   : > { %488 = vmatpush1.msra.mxu0 %v2243_v61  ;;  %v605_v23 = vand.u32 4294901760, %v604_v29  ;;  %v611_v4 = vand.u32 4294901760, %v610_v17 }
  0xb1   : > { %1829 = vmatprep.subr.bf16.mxu0 %v1828_v36  ;;  %549 = vmatmul.mubr.f32.vlgmr.msra.gmra.mrb[0].mxu0 %v548_v0  ;;  %v1832_v12 = vpack.c.bf16 %v595_v35, %v583_v33  ;;  %v1834_v47 = vpack.c.bf16 %v601_v44, %v589_v46  ;;  %v1840_v0 = vpack.c.bf16 %v2222_v40, %v2199_v10 }
  0xb2   : > { %1831 = vmatpush1.bf16.msra.mxu0 %v1830_v43  ;;  %v606_v53 = vsub.f32 %v604_v29, %v605_v23  ;;  %669 = vmatprep.mubr.f32.mxu0 %v1972_v13  ;;  %v612_v45 = vsub.f32 %v610_v17, %v611_v4  ;;  %v1852_v40 = vpack.c.bf16 %v569_v9, %v557_v11 }
  0xb3   : > { %1833 = vmatprep.subr.bf16.mxu0 %v1832_v12  ;;  %v1842_v12 = vpack.c.bf16 %v2226_v42, %v2204_v20  ;;  %v1858_v9 = vpack.c.bf16 %v2512_v55, %v2511_v50 }
  0xb4   : > { %v607_v52 = vand.u32 4294901760, %v606_v53  ;;  %v613_v3 = vand.u32 4294901760, %v612_v45 }
  0xb6   : > { %1835 = vmatpush1.bf16.msra.mxu0 %v1834_v47  ;;  %v1854_v47 = vpack.c.bf16 %v575_v15, %v563_v22 }
  0xb7   : > { %608 = vmatprep.subr.mxu0 %v607_v52 }
  0xba   : > { %614 = vmatpush1.msra.mxu0 %v613_v3 }
  0xbb   : > { %1837 = vmatprep.subr.bf16.mxu0 %v1836_v62  ;;  %671 = vmatmul.mubr.f32.vlgmr.msra.gmra.mrb[0].mxu0 %v2164_v34  ;;  %v1153_v62 = vld [vmem:[%s2503_s3] sm:$0xff] }
  0xbc   : > { %1839 = vmatpush1.bf16.msra.mxu0 %v1838_v63  ;;  %761 = vmatprep.mubr.f32.mxu0 %v1972_v13 }
  0xbd   : > { %1841 = vmatprep.subr.bf16.mxu0 %v1840_v0 }
  0xc0   : > { %1843 = vmatpush1.bf16.msra.mxu0 %v1842_v12 }
  0xc1   : > { %703 = vmatprep.subr.mxu0 %v604_v29 }
  0xc4   : > { %706 = vmatpush1.msra.mxu0 %v610_v17  ;;  %v1856_v17 = vpack.c.bf16 %v593_v58, %v2510_v16 }
  0xc5   : > { %1845 = vmatprep.subr.bf16.mxu0 %v2172_v48  ;;  %764 = vmatmul.mubr.f32.vlgmr.msra.gmra.mrb[0].mxu0 %v2183_v54 }
  0xc6   : > { %1847 = vmatpush1.bf16.msra.mxu0 %v2179_v51  ;;  %844 = vmatprep.mubr.f32.mxu0 %v1972_v13 }
  0xc7   : > { %1849 = vmatprep.subr.bf16.mxu0 %v2220_v39 }
  0xca   : > { %1851 = vmatpush1.bf16.msra.mxu0 %v2224_v41 }
  0xcb   : > { %787 = vmatprep.subr.mxu0 %v2241_v60 }
  0xce   : > { %789 = vmatpush1.msra.mxu0 %v2243_v61 }
  0xcf   : > { %1853 = vmatprep.subr.bf16.mxu0 %v1852_v40  ;;  %848 = vmatmul.mubr.f32.vlgmr.msra.gmra.mrb[0].mxu0 %v2509_v6  ;;  %v1165_v6 = vsel %vm458_vm7, %v1153_v62, 0 }
  0xd0   : > { %1855 = vmatpush1.bf16.msra.mxu0 %v1854_v47  ;;  %948 = vmatprep.mubr.f32.mxu0 %v1972_v13 }
  0xd1   : > { %1857 = vmatprep.subr.bf16.mxu0 %v1856_v17 }
  0xd4   : > { %1859 = vmatpush1.bf16.msra.mxu0 %v1858_v9 }
  0xd5   : > { %889 = vmatprep.subr.mxu0 %v605_v23 }
  0xd8   : > { %893 = vmatpush1.msra.mxu0 %v611_v4 }
  0xd9   : > { %1861 = vmatprep.subr.bf16.mxu0 %v2172_v48  ;;  %950 = vmatmul.mubr.f32.vlgmr.msra.gmra.mrb[0].mxu0 %v2164_v34 }
  0xda   : > { %1863 = vmatpush1.bf16.msra.mxu0 %v2179_v51  ;;  %1030 = vmatprep.mubr.f32.mxu0 %v1972_v13 }
  0xdb   : > { %1865 = vmatprep.subr.bf16.mxu0 %v2220_v39 }
  0xde   : > { %1867 = vmatpush1.bf16.msra.mxu0 %v2224_v41 }
  0xdf   : > { %973 = vmatprep.subr.mxu0 %v2241_v60 }
  0xe2   : > { %975 = vmatpush1.msra.mxu0 %v2243_v61 }
  0xe3   : > { %1032 = vmatmul.mubr.f32.vlgmr.msra.gmra.mrb[0].mxu0 %v2164_v34 }
 0x1b6   : > { %v1033_v54 = vpop.f32.mrb[0].mxu0 }
 0x1b7   : > { %v1038_v59 = vmax.f32 %v1033_v54, 0.0  ;;  %v1035_v1 = vpop.f32.mrb[1].mxu0 }
 0x1b8   : > { %v1039_v48 = vmax.f32 %v1035_v1, 0.0  ;;  %v2359_v1 = vand.u32 4294901760, %v1165_v6 }
 0x1b9   : > { %v1040_v10 = vmin.f32 %v1038_v59, 6.0 }
 0x1ba   : > { %v1041_v11 = vmin.f32 %v1039_v48, 6.0 }
 0x1bb   : > { %1052 = vrot.lane.b32.xlu0 %v1040_v10, %s1964_s22  ;;  %v1094_v51 = vmul.f32 %v1040_v10, %v2022_v7 }
 0x1bc   : > { %1054 = vrot.lane.b32.xlu1 %v1041_v11, %s1964_s22  ;;  %v1095_v15 = vmul.f32 %v1041_v11, %v2025_v8 }
 0x1bd   : > { %1096 = vst [vmem:[#allocation3 + $0x20] sm:$0xf] %v1094_v51 }
 0x1be   : > { %1097 = vst [vmem:[#allocation3 + $0x28] sm:$0xf] %v1095_v15 }
 0x1bf   : > { %1078 = vrot.lane.b32.xlu0 %v1040_v10, %s1963_s21 }
 0x1c0   : > { %1080 = vrot.lane.b32.xlu1 %v1041_v11, %s1963_s21 }
 0x1c3   : > { %1042 = vrot.lane.b32.xlu0 %v1040_v10, %s1965_s25 }
 0x1c4   : > { %1044 = vrot.lane.b32.xlu1 %v1041_v11, %s1965_s25  ;;  %s1819_s25 = sshll.u32 %s2514_s16, 4 }
 0x1c7   : > { %1068 = vrot.lane.b32.xlu0 %v1040_v10, %s1966_s26 }
 0x1c8   : > { %1070 = vrot.lane.b32.xlu1 %v1041_v11, %s1966_s26 }
 0x1cb   : > { %1098 = vrot.lane.b32.xlu0 %v1040_v10, %s1967_s27 }
 0x1cc   : > { %1100 = vrot.lane.b32.xlu1 %v1041_v11, %s1967_s27 }
 0x1cf   : > { %1124 = vrot.lane.b32.xlu0 %v1040_v10, %s1969_s28 }
 0x1d0   : > { %1126 = vrot.lane.b32.xlu1 %v1041_v11, %s1969_s28  ;;  %s197_s28 = scalar_lea.vmem %s2504_s4, %s1819_s25 }
 0x1d3   : > { %1114 = vrot.lane.b32.xlu0 %v1040_v10, %s1970_s29 }
 0x1d4   : > { %1116 = vrot.lane.b32.xlu1 %v1041_v11, %s1970_s29 }
 0x1d7   : > { %1140 = vrot.lane.b32.xlu0 %v1040_v10, %s1971_s30 }
 0x1d8   : > { %1142 = vrot.lane.b32.xlu1 %v1041_v11, %s1971_s30 }
 0x22d   : > { %v1053_v7 = vpop.permute.xlu0 %1052 }
 0x22e   : > { %v1055_v8 = vpop.permute.xlu1 %1054 }
 0x22f   : > { %v1056_v34 = vsel %vm247_vm3, %v1053_v7, %v1055_v8  ;;  %v1057_v20 = vsel %vm247_vm3, %v1055_v8, %v1053_v7 }
 0x230   : > { %v1058_v22 = vmul.f32 %v1057_v20, %v2081_v31  ;;  %v1059_v23 = vmul.f32 %v1056_v34, %v2084_v32 }
 0x231   : > { %v1079_v39 = vpop.permute.xlu0 %1078 }
 0x232   : > { %v1062_v41 = vrot.slane %v1058_v22, 4  ;;  %v1063_v42 = vrot.slane %v1059_v23, 4  ;;  %v1081_v58 = vpop.permute.xlu1 %1080 }
 0x233   : > { %v1082_v4 = vsel %vm297_vm1, %v1079_v39, %v1081_v58  ;;  %v1083_v60 = vsel %vm297_vm1, %v1081_v58, %v1079_v39 }
 0x234   : > { %1066 = vst [vmem:[#allocation3] sm:$0xf0] %v1062_v41  ;;  %1067 = vst [vmem:[#allocation3 + $0x8] sm:$0xf0] %v1063_v42  ;;  %v1084_v61 = vmul.f32 %v1083_v60, %v2052_v18  ;;  %v1085_v21 = vmul.f32 %v1082_v4, %v2055_v19  ;;  %v2375_v42 = vsub.f32 %v1165_v6, %v2359_v1 }
 0x235   : > { %v1043_v28 = vpop.permute.xlu0 %1042 }
 0x236   : > { %v1088_v31 = vrot.slane %v1084_v61, 4  ;;  %v1089_v29 = vrot.slane %v1085_v21, 4  ;;  %v1045_v32 = vpop.permute.xlu1 %1044 }
 0x237   : > { %v1046_v36 = vsel %vm225_vm2, %v1043_v28, %v1045_v32  ;;  %v1047_v33 = vsel %vm225_vm2, %v1045_v32, %v1043_v28 }
 0x238   : > { %1092 = vst [vmem:[#allocation3 + $0x10] sm:$0xf0] %v1088_v31  ;;  %1093 = vst [vmem:[#allocation3 + $0x18] sm:$0xf0] %v1089_v29  ;;  %v1048_v35 = vmul.f32 %v1047_v33, %v2070_v26  ;;  %v1049_v43 = vmul.f32 %v1046_v36, %v2073_v27 }
 0x239   : > { %v1069_v44 = vpop.permute.xlu0 %1068 }
 0x23a   : > { %1050 = vst [vmem:[#allocation3] sm:$0xf] %v1048_v35  ;;  %1051 = vst [vmem:[#allocation3 + $0x8] sm:$0xf] %v1049_v43  ;;  %v1071_v18 = vpop.permute.xlu1 %1070  ;;  %v1250_v35 = vand.u32 4294901760, %v2375_v42 }
 0x23b   : > { %v1072_v19 = vsel %vm275_vm4, %v1069_v44, %v1071_v18  ;;  %v1073_v46 = vsel %vm275_vm4, %v1071_v18, %v1069_v44 }
 0x23c   : > { %v1074_v53 = vmul.f32 %v1073_v46, %v2088_v37  ;;  %v1075_v52 = vmul.f32 %v1072_v19, %v2091_v38 }
 0x23d   : > { %v1099_v45 = vpop.permute.xlu0 %1098 }
 0x23e   : > { %1076 = vst [vmem:[#allocation3 + $0x10] sm:$0xf] %v1074_v53  ;;  %1077 = vst [vmem:[#allocation3 + $0x18] sm:$0xf] %v1075_v52  ;;  %v1101_v26 = vpop.permute.xlu1 %1100 }
 0x23f   : > { %v1102_v27 = vsel %vm344_vm5, %v1099_v45, %v1101_v26  ;;  %v1103_v3 = vsel %vm344_vm5, %v1101_v26, %v1099_v45  ;;  %v1251_v26 = vsub.f32 %v2375_v42, %v1250_v35 }
 0x240   : > { %v1104_v63 = vmul.f32 %v1102_v27, %v2116_v56  ;;  %v1105_v37 = vmul.f32 %v1103_v3, %v2119_v57 }
 0x241   : > { %v1125_v0 = vpop.permute.xlu0 %1124  ;;  %v1155_v47 = vld [vmem:[#allocation3 + $0x8] sm:$0xff]  ;;  %v1154_v57 = vld [vmem:[#allocation3] sm:$0xff] }
 0x242   : > { %v1108_v38 = vrot.slane %v1104_v63, 4  ;;  %v1109_v12 = vrot.slane %v1105_v37, 4  ;;  %v1127_v40 = vpop.permute.xlu1 %1126  ;;  %v1173_v54 = vand.u32 4294901760, %v1155_v47  ;;  %v1175_v8 = vand.u32 4294901760, %v1154_v57 }
 0x243   : > { %v1128_v16 = vsel %vm394_vm6, %v1125_v0, %v1127_v40  ;;  %v1129_v17 = vsel %vm394_vm6, %v1127_v40, %v1125_v0 }
 0x244   : > { %1112 = vst [vmem:[#allocation3 + $0x20] sm:$0xf0] %v1108_v38  ;;  %1113 = vst [vmem:[#allocation3 + $0x28] sm:$0xf0] %v1109_v12  ;;  %v1130_v50 = vmul.f32 %v1128_v16, %v2135_v2  ;;  %v1131_v56 = vmul.f32 %v1129_v17, %v2138_v5  ;;  %v2377_v58 = vsub.f32 %v1155_v47, %v1173_v54 }
 0x245   : > { %v1115_v55 = vpop.permute.xlu0 %1114  ;;  %v1157_v9 = vld [vmem:[#allocation3 + $0x18] sm:$0xff]  ;;  %v1156_v59 = vld [vmem:[#allocation3 + $0x10] sm:$0xff]  ;;  %v2388_v29 = vsub.f32 %v1154_v57, %v1175_v8 }
 0x246   : > { %v1134_v48 = vrot.slane %v1130_v50, 4  ;;  %v1135_v10 = vrot.slane %v1131_v56, 4  ;;  %v1117_v11 = vpop.permute.xlu1 %1116  ;;  %v1177_v51 = vand.u32 4294901760, %v1157_v9  ;;  %v1179_v15 = vand.u32 4294901760, %v1156_v59 }
 0x247   : > { %v1118_v7 = vsel %vm372_vm8, %v1115_v55, %v1117_v11  ;;  %v1119_v2 = vsel %vm372_vm8, %v1117_v11, %v1115_v55  ;;  %v1261_v33 = vand.u32 4294901760, %v2377_v58  ;;  %v1267_v19 = vand.u32 4294901760, %v2388_v29 }
 0x248   : > { %1138 = vst [vmem:[#allocation3 + $0x30] sm:$0xf0] %v1134_v48  ;;  %1139 = vst [vmem:[#allocation3 + $0x38] sm:$0xf0] %v1135_v10  ;;  %v1120_v5 = vmul.f32 %v1118_v7, %v2155_v24  ;;  %v1121_v34 = vmul.f32 %v1119_v2, %v2158_v25  ;;  %v2367_v20 = vpack.c.bf16 %v1177_v51, %v1173_v54 }
 0x249   : > { %v1141_v22 = vpop.permute.xlu0 %1140  ;;  %v2369_v23 = vsub.f32 %v1157_v9, %v1177_v51  ;;  %v2371_v39 = vpack.c.bf16 %v1179_v15, %v1175_v8  ;;  %v2384_v4 = vsub.f32 %v1156_v59, %v1179_v15  ;;  %v1262_v45 = vsub.f32 %v2377_v58, %v1261_v33 }
 0x24a   : > { %1122 = vst [vmem:[#allocation3 + $0x30] sm:$0xf] %v1120_v5  ;;  %1123 = vst [vmem:[#allocation3 + $0x38] sm:$0xf] %v1121_v34  ;;  %1869 = vmatprep.subr.bf16.mxu1 %v2367_v20  ;;  %v1143_v41 = vpop.permute.xlu1 %1142  ;;  %v1268_v40 = vsub.f32 %v2388_v29, %v1267_v19  ;;  %v1252_v59 = vand.u32 4294901760, %v1251_v26 }
 0x24b   : > { %v1144_v24 = vsel %vm422_vm9, %v1141_v22, %v1143_v41  ;;  %v1145_v25 = vsel %vm422_vm9, %v1143_v41, %v1141_v22  ;;  %1871 = vmatpush1.bf16.msra.mxu1 %v2371_v39  ;;  %v1159_v60 = vld [vmem:[#allocation3 + $0x28] sm:$0xff]  ;;  %v1158_v61 = vld [vmem:[#allocation3 + $0x20] sm:$0xff]  ;;  %v1273_v36 = vand.u32 4294901760, %v2369_v23  ;;  %v1279_v43 = vand.u32 4294901760, %v2384_v4 }
 0x24c   : > { %v1146_v21 = vmul.f32 %v1144_v24, %v2162_v30  ;;  %v1147_v28 = vmul.f32 %v1145_v25, %v2175_v49  ;;  %v1181_v31 = vand.u32 4294901760, %v1159_v60  ;;  %v1183_v32 = vand.u32 4294901760, %v1158_v61 }
 0x24d   : > { %v1274_v49 = vsub.f32 %v2369_v23, %v1273_v36  ;;  %v1280_v27 = vsub.f32 %v2384_v4, %v1279_v43  ;;  %v1263_v54 = vand.u32 4294901760, %v1262_v45  ;;  %v1269_v51 = vand.u32 4294901760, %v1268_v40 }
 0x24e   : > { %1148 = vst [vmem:[#allocation3 + $0x40] sm:$0xf] %v1146_v21  ;;  %1149 = vst [vmem:[#allocation3 + $0x48] sm:$0xf] %v1147_v28  ;;  %v2391_v14 = vsub.f32 %v1159_v60, %v1181_v31  ;;  %v2396_v18 = vsub.f32 %v1158_v61, %v1183_v32  ;;  %v1902_v45 = vpack.c.bf16 %v1279_v43, %v1267_v19 }
 0x24f   : > { %v1275_v12 = vand.u32 4294901760, %v1274_v49  ;;  %v1281_v9 = vand.u32 4294901760, %v1280_v27 }
 0x250   : > { %v1285_v46 = vand.u32 4294901760, %v2391_v14  ;;  %v1291_v6 = vand.u32 4294901760, %v2396_v18 }
 0x251   : > { %v1161_v44 = vld [vmem:[#allocation3 + $0x38] sm:$0xff]  ;;  %v1160_v30 = vld [vmem:[#allocation3 + $0x30] sm:$0xff]  ;;  %v1876_v2 = vpack.c.bf16 %v1275_v12, %v1263_v54  ;;  %v1878_v34 = vpack.c.bf16 %v1281_v9, %v1269_v51 }
 0x252   : > { %v1185_v53 = vand.u32 4294901760, %v1161_v44  ;;  %v1187_v52 = vand.u32 4294901760, %v1160_v30  ;;  %v1286_v47 = vsub.f32 %v2391_v14, %v1285_v46  ;;  %v1292_v15 = vsub.f32 %v2396_v18, %v1291_v6 }
 0x254   : > { %v2412_v3 = vpack.c.bf16 %v1185_v53, %v1181_v31  ;;  %v2414_v62 = vsub.f32 %v1161_v44, %v1185_v53  ;;  %v2416_v63 = vpack.c.bf16 %v1187_v52, %v1183_v32  ;;  %v2418_v37 = vsub.f32 %v1160_v30, %v1187_v52 }
 0x255   : > { %v1163_v0 = vld [vmem:[#allocation3 + $0x48] sm:$0x1f]  ;;  %v1162_v38 = vld [vmem:[#allocation3 + $0x40] sm:$0x1f]  ;;  %v1287_v8 = vand.u32 4294901760, %v1286_v47  ;;  %v1293_v60 = vand.u32 4294901760, %v1292_v15  ;;  %v1884_v44 = vpack.c.bf16 %v2369_v23, %v2377_v58  ;;  %v1886_v30 = vpack.c.bf16 %v2384_v4, %v2388_v29 }
 0x256   : > { %1873 = vmatprep.subr.bf16.mxu1 %v2412_v3  ;;  %v1171_v16 = vsel %vm462_vm10, %v1163_v0, 0  ;;  %v1168_v17 = vsel %vm462_vm10, %v1162_v38, 0  ;;  %v1297_v50 = vand.u32 4294901760, %v2414_v62  ;;  %v1303_v56 = vand.u32 4294901760, %v2418_v37 }
 0x257   : > { %1875 = vmatpush1.bf16.msra.mxu1 %v2416_v63  ;;  %v2433_v57 = vand.u32 4294901760, %v1171_v16  ;;  %v2435_v55 = vand.u32 4294901760, %v1168_v17  ;;  %v1888_v49 = vpack.c.bf16 %v2414_v62, %v2391_v14  ;;  %v1890_v53 = vpack.c.bf16 %v2418_v37, %v2396_v18 }
 0x258   : > { %v1298_v48 = vsub.f32 %v2414_v62, %v1297_v50  ;;  %v1304_v10 = vsub.f32 %v2418_v37, %v1303_v56  ;;  %v1900_v52 = vpack.c.bf16 %v1273_v36, %v1261_v33  ;;  %v1904_v26 = vpack.c.bf16 %v1297_v50, %v1285_v46 }
 0x259   : > { %1190 = vmatprep.subr.mxu1 %v2433_v57  ;;  %v1314_v11 = vsub.f32 %v1168_v17, %v2435_v55  ;;  %v1308_v7 = vsub.f32 %v1171_v16, %v2433_v57  ;;  %v1906_v23 = vpack.c.bf16 %v1303_v56, %v1291_v6 }
 0x25a   : > { %v1299_v5 = vand.u32 4294901760, %v1298_v48  ;;  %v1305_v22 = vand.u32 4294901760, %v1304_v10 }
 0x25b   : > { %1192 = vmatpush1.msra.mxu1 %v2435_v55  ;;  %v1309_v41 = vand.u32 4294901760, %v1308_v7  ;;  %v1315_v24 = vand.u32 4294901760, %v1314_v11 }
 0x25c   : > { %1877 = vmatprep.subr.bf16.mxu1 %v1876_v2  ;;  %1253 = vmatmul.mubr.f32.vlgmr.msra.gmra.mrb[0].mxu1 %v1252_v59  ;;  %v1880_v25 = vpack.c.bf16 %v1299_v5, %v1287_v8  ;;  %v1882_v21 = vpack.c.bf16 %v1305_v22, %v1293_v60 }
 0x25d   : > { %1879 = vmatpush1.bf16.msra.mxu1 %v1878_v34  ;;  %v1310_v61 = vsub.f32 %v1308_v7, %v1309_v41  ;;  %1373 = vmatprep.mubr.f32.mxu1 %v1972_v13  ;;  %v1316_v31 = vsub.f32 %v1314_v11, %v1315_v24 }
 0x25e   : > { %1881 = vmatprep.subr.bf16.mxu1 %v1880_v25 }
 0x25f   : > { %v1311_v28 = vand.u32 4294901760, %v1310_v61  ;;  %v1317_v32 = vand.u32 4294901760, %v1316_v31 }
 0x261   : > { %1883 = vmatpush1.bf16.msra.mxu1 %v1882_v21 }
 0x262   : > { %1312 = vmatprep.subr.mxu1 %v1311_v28 }
 0x265   : > { %1318 = vmatpush1.msra.mxu1 %v1317_v32 }
 0x266   : > { %1885 = vmatprep.subr.bf16.mxu1 %v1884_v44  ;;  %1375 = vmatmul.mubr.f32.vlgmr.msra.gmra.mrb[0].mxu1 %v2359_v1 }
 0x267   : > { %1887 = vmatpush1.bf16.msra.mxu1 %v1886_v30  ;;  %1465 = vmatprep.mubr.f32.mxu1 %v1972_v13 }
 0x268   : > { %1889 = vmatprep.subr.bf16.mxu1 %v1888_v49 }
 0x26b   : > { %1891 = vmatpush1.bf16.msra.mxu1 %v1890_v53 }
 0x26c   : > { %1407 = vmatprep.subr.mxu1 %v1308_v7 }
 0x26f   : > { %1410 = vmatpush1.msra.mxu1 %v1314_v11 }
 0x270   : > { %1893 = vmatprep.subr.bf16.mxu1 %v2367_v20  ;;  %1468 = vmatmul.mubr.f32.vlgmr.msra.gmra.mrb[0].mxu1 %v2375_v42 }
 0x271   : > { %1895 = vmatpush1.bf16.msra.mxu1 %v2371_v39  ;;  %1548 = vmatprep.mubr.f32.mxu1 %v1972_v13 }
 0x272   : > { %1897 = vmatprep.subr.bf16.mxu1 %v2412_v3 }
 0x275   : > { %1899 = vmatpush1.bf16.msra.mxu1 %v2416_v63 }
 0x276   : > { %1491 = vmatprep.subr.mxu1 %v2433_v57 }
 0x279   : > { %1493 = vmatpush1.msra.mxu1 %v2435_v55 }
 0x27a   : > { %1901 = vmatprep.subr.bf16.mxu1 %v1900_v52  ;;  %1552 = vmatmul.mubr.f32.vlgmr.msra.gmra.mrb[0].mxu1 %v1250_v35 }
 0x27b   : > { %1903 = vmatpush1.bf16.msra.mxu1 %v1902_v45  ;;  %1652 = vmatprep.mubr.f32.mxu1 %v1972_v13 }
 0x27c   : > { %1905 = vmatprep.subr.bf16.mxu1 %v1904_v26 }
 0x27f   : > { %1907 = vmatpush1.bf16.msra.mxu1 %v1906_v23 }
 0x280   : > { %1593 = vmatprep.subr.mxu1 %v1309_v41 }
 0x283   : > { %1597 = vmatpush1.msra.mxu1 %v1315_v24 }
 0x284   : > { %1909 = vmatprep.subr.bf16.mxu1 %v2367_v20  ;;  %1654 = vmatmul.mubr.f32.vlgmr.msra.gmra.mrb[0].mxu1 %v2359_v1 }
 0x285   : > { %1911 = vmatpush1.bf16.msra.mxu1 %v2371_v39  ;;  %1734 = vmatprep.mubr.f32.mxu1 %v1972_v13 }
 0x286   : > { %1913 = vmatprep.subr.bf16.mxu1 %v2412_v3 }
 0x289   : > { %1915 = vmatpush1.bf16.msra.mxu1 %v2416_v63 }
 0x28a   : > { %1677 = vmatprep.subr.mxu1 %v2433_v57 }
 0x28d   : > { %1679 = vmatpush1.msra.mxu1 %v2435_v55 }
 0x28e   : > { %1736 = vmatmul.mubr.f32.vlgmr.msra.gmra.mrb[0].mxu1 %v2359_v1 }
 0x361   : > { %v1737_v20 = vpop.f32.mrb[0].mxu1 }
 0x362   : > { %1742 = vst [vmem:[%s197_s28] sm:$0xff] %v1737_v20  ;;  %v1739_v39 = vpop.f32.mrb[1].mxu1 }
 0x363   : > { %1743 = vst [vmem:[%s197_s28 + $0x8] sm:$0xff] %v1739_v39 }
 0x364 PF: > { %s14_s15 = sadd.s32 1, %s1961_s15  }
 0x365   : > { %p11_p4 = scmp.ge.s32.totalorder %s14_s15, 4  }
 0x367   :  { %13 = sbr.rel (!%p11_p4) target bundleno = 1 (0x1), region = 76 }

</bundles_post_ra>
